<compile_context>
chip_gen: v6e
topology: v6e:2x2x1
jax: 0.10.0
libtpu: 0.0.40
codegen_flags: <defaults>
</compile_context>

<pallas_src>
import functools
import math

import jax
import jax.numpy as jnp
from jax.experimental import pallas as pl
from jax.experimental.pallas import tpu as pltpu


def _default_vmem_limit():
    # ~half the physical VMEM of this generation (v5e/v6e: 64 MiB, v7x: 32 MiB).
    try:
        cap = int(pltpu.get_tpu_info().vmem_capacity_bytes)
        return max(32 * 1024 * 1024, min(cap // 2, 96 * 1024 * 1024))
    except Exception:
        return 32 * 1024 * 1024


_VMEM_LIMIT = _default_vmem_limit()


def _pick_tn(dout, target=512):
    """Lane-dense output-column tile: full dim at small sizes, otherwise the
    largest multiple of 128 <= target that divides dout (matches the 256-wide
    MXU on v6e/v7x when possible); falls back to the full (always legal) dim."""
    if dout <= target:
        return dout
    for tn in range(target, 127, -128):
        if dout % tn == 0:
            return tn
    return dout


# ---------------------------------------------------------------------------
# Kernels
# ---------------------------------------------------------------------------
def _norm_linear_kernel(x_ref, wt_ref, b_ref, o_ref, normed_ref, *, eps, seq):
    """y = LayerNormalization(x) @ W^T + b, tiled over output columns.

    Grid = (batch, column-tile).  The quirky norm (mean over hidden dim, unbiased
    std over the sequence dim) of the full (S, Din) row is computed once per
    batch row (j == 0) and cached as bf16 in VMEM scratch, reused by every
    column tile (the column axis therefore stays 'arbitrary')."""
    @pl.when(pl.program_id(1) == 0)
    def _():
        x = x_ref[0]                                            # (S, Din) f32
        mean = jnp.mean(x, axis=-1, keepdims=True)              # hidden-dim mean
        s1 = jnp.sum(x, axis=0, keepdims=True)                  # sequence-dim std
        s2 = jnp.sum(x * x, axis=0, keepdims=True)
        var = (s2 - s1 * s1 / seq) / (seq - 1.0)
        std = jnp.sqrt(jnp.maximum(var, 0.0))
        # exact divide on the norm path (approx reciprocal would scale every output)
        normed_ref[...] = ((x - mean) / (std + eps)).astype(jnp.bfloat16)

    y = jnp.dot(normed_ref[...], wt_ref[...], preferred_element_type=jnp.float32)
    o_ref[0] = (y + b_ref[...]).astype(o_ref.dtype)             # bf16 activation out


def _linear_kernel(a_ref, wt_ref, b_ref, o_ref):
    """y = a @ W^T + b; a already bf16 (pre-cast once in XLA), weight bf16."""
    y = jnp.dot(a_ref[0], wt_ref[...], preferred_element_type=jnp.float32)
    o_ref[0] = (y + b_ref[...]).astype(o_ref.dtype)


def _linear_residual_kernel(a_ref, wt_ref, b_ref, r_ref, o_ref):
    """residual + (a @ W^T + b); dropout (eval mode) is identity; residual f32."""
    y = jnp.dot(a_ref[0], wt_ref[...], preferred_element_type=jnp.float32)
    o_ref[0] = (r_ref[0] + y + b_ref[...]).astype(o_ref.dtype)


def _mha_kernel(q_ref, k_ref, v_ref, bias_ref, o_ref, *, heads, dk,
                q_off, k_off, v_off):
    """Scaled-dot-product attention for `heads` heads sliced from bf16 blocks.

    The 1/sqrt(dk) scale is folded into the Q projection weights (pack_params),
    so scores are just q @ k^T + additive mask bias.  Both matmuls run bf16 on
    the MXU with f32 accumulation; output written directly in (S, D) layout."""
    bias = bias_ref[0]                                           # (Sq, Sk) f32
    for i in range(heads):
        q = q_ref[0, :, q_off + i * dk: q_off + (i + 1) * dk]    # (Sq, dk) bf16
        k = k_ref[0, :, k_off + i * dk: k_off + (i + 1) * dk]    # (Sk, dk) bf16
        v = v_ref[0, :, v_off + i * dk: v_off + (i + 1) * dk]    # (Sk, dk) bf16
        # q @ k^T via the MXU's transposed-RHS feed (no materialized transpose).
        s = jax.lax.dot_general(q, k, (((1,), (1,)), ((), ())),
                                preferred_element_type=jnp.float32)
        s = s + bias                                             # masked_fill_ as add-bias
        m = jnp.max(s, axis=-1, keepdims=True)
        p = jnp.exp(s - m)
        p = p * pl.reciprocal(jnp.sum(p, axis=-1, keepdims=True), approx=True)
        o = jnp.dot(p.astype(jnp.bfloat16), v, preferred_element_type=jnp.float32)
        o_ref[0, :, i * dk:(i + 1) * dk] = o.astype(o_ref.dtype)


def _ffn_kernel(x_ref, w1t_ref, b1_ref, w2t_ref, b2_ref, o_ref,
                normed_ref, acc_ref, *, eps, seq):
    """Fused residual FFN: x + W2 @ relu(W1 @ norm(x) + b1) + b2.

    Grid = (batch, d_ff-tile) with d_ff as a reduction ('arbitrary') axis; the
    (S, d_ff) hidden never leaves VMEM.  Norm computed once per batch row."""
    j = pl.program_id(1)

    @pl.when(j == 0)
    def _():
        x = x_ref[0]                                            # (S, D) f32
        mean = jnp.mean(x, axis=-1, keepdims=True)
        s1 = jnp.sum(x, axis=0, keepdims=True)
        s2 = jnp.sum(x * x, axis=0, keepdims=True)
        var = (s2 - s1 * s1 / seq) / (seq - 1.0)
        std = jnp.sqrt(jnp.maximum(var, 0.0))
        normed_ref[...] = ((x - mean) / (std + eps)).astype(jnp.bfloat16)
        acc_ref[...] = jnp.zeros_like(acc_ref)

    hidden = jnp.dot(normed_ref[...], w1t_ref[...],
                     preferred_element_type=jnp.float32) + b1_ref[...]
    hidden = jnp.maximum(hidden, 0.0).astype(jnp.bfloat16)      # relu -> bf16 for MXU
    acc_ref[...] += jnp.dot(hidden, w2t_ref[...],
                            preferred_element_type=jnp.float32)

    @pl.when(j == pl.num_programs(1) - 1)
    def _():
        # dropout (eval mode) is identity; residual stream stays f32.
        o_ref[0] = (x_ref[0] + acc_ref[...] + b2_ref[...]).astype(o_ref.dtype)


# ---------------------------------------------------------------------------
# Wrappers
# ---------------------------------------------------------------------------
def norm_linear(x, wt, b, *, eps=1e-6):
    """[LayerNormalization(x)] @ wt + b.  x f32 (B,S,Din); wt pre-transposed bf16
    (Din,Dout); output bf16 activation."""
    B, S, Din = x.shape
    assert S >= 2, "unbiased std over the sequence axis requires S >= 2"
    Dout = wt.shape[1]
    tn = _pick_tn(Dout)
    kernel = functools.partial(_norm_linear_kernel, eps=eps, seq=float(S))
    cost = pl.CostEstimate(
        flops=int(2 * B * S * Din * Dout),
        transcendentals=int(B * Din),
        bytes_accessed=int(4 * B * S * Din + 2 * B * S * Dout + 2 * Din * Dout + 4 * Dout))
    return pl.pallas_call(
        kernel,
        out_shape=jax.ShapeDtypeStruct((B, S, Dout), jnp.bfloat16),
        grid=(B, Dout // tn),
        in_specs=[
            pl.BlockSpec((1, S, Din), lambda bi, j: (bi, 0, 0)),
            pl.BlockSpec((Din, tn), lambda bi, j: (0, j)),
            pl.BlockSpec((1, tn), lambda bi, j: (0, j)),
        ],
        out_specs=pl.BlockSpec((1, S, tn), lambda bi, j: (bi, 0, j)),
        scratch_shapes=[pltpu.VMEM((S, Din), jnp.bfloat16)],
        compiler_params=pltpu.CompilerParams(
            # column axis reuses the cached normed scratch -> must stay 'arbitrary'
            dimension_semantics=("parallel", "arbitrary"),
            vmem_limit_bytes=_VMEM_LIMIT),
        cost_estimate=cost,
    )(x, wt, b)


def linear(a, wt, b):
    """a @ wt + b.  a bf16 (pre-cast once in XLA); wt pre-transposed bf16."""
    B, S, Din = a.shape
    Dout = wt.shape[1]
    tn = _pick_tn(Dout)
    cost = pl.CostEstimate(
        flops=int(2 * B * S * Din * Dout), transcendentals=0,
        bytes_accessed=int(2 * B * S * (Din + Dout) + 2 * Din * Dout + 4 * Dout))
    return pl.pallas_call(
        _linear_kernel,
        out_shape=jax.ShapeDtypeStruct((B, S, Dout), jnp.bfloat16),
        grid=(B, Dout // tn),
        in_specs=[
            pl.BlockSpec((1, S, Din), lambda bi, j: (bi, 0, 0)),
            pl.BlockSpec((Din, tn), lambda bi, j: (0, j)),
            pl.BlockSpec((1, tn), lambda bi, j: (0, j)),
        ],
        out_specs=pl.BlockSpec((1, S, tn), lambda bi, j: (bi, 0, j)),
        compiler_params=pltpu.CompilerParams(
            dimension_semantics=("parallel", "parallel"),
            vmem_limit_bytes=_VMEM_LIMIT),
        cost_estimate=cost,
    )(a, wt, b)


def linear_residual(a, wt, b, residual):
    """residual + (a @ wt + b).  a bf16, residual/output f32 (the residual stream)."""
    B, S, Din = a.shape
    Dout = wt.shape[1]
    tn = _pick_tn(Dout)
    cost = pl.CostEstimate(
        flops=int(2 * B * S * Din * Dout), transcendentals=0,
        bytes_accessed=int(2 * B * S * Din + 8 * B * S * Dout + 2 * Din * Dout + 4 * Dout))
    return pl.pallas_call(
        _linear_residual_kernel,
        out_shape=jax.ShapeDtypeStruct((B, S, Dout), jnp.float32),
        grid=(B, Dout // tn),
        in_specs=[
            pl.BlockSpec((1, S, Din), lambda bi, j: (bi, 0, 0)),
            pl.BlockSpec((Din, tn), lambda bi, j: (0, j)),
            pl.BlockSpec((1, tn), lambda bi, j: (0, j)),
            pl.BlockSpec((1, S, tn), lambda bi, j: (bi, 0, j)),
        ],
        out_specs=pl.BlockSpec((1, S, tn), lambda bi, j: (bi, 0, j)),
        compiler_params=pltpu.CompilerParams(
            dimension_semantics=("parallel", "parallel"),
            vmem_limit_bytes=_VMEM_LIMIT),
        cost_estimate=cost,
    )(a, wt, b, residual)


def mha(q_src, kv_src, bias, *, h, dk, q_off, k_off, v_off):
    """Multi-head attention core on pre-projected bf16 activations.

    q_src (B,Sq,Wq) and kv_src (B,Sk,Wkv) are fused projection outputs consumed
    directly (no XLA split/transpose); q/k/v live at element column offsets
    q_off/k_off/v_off.  Output is bf16 already in (B, Sq, h*dk) layout."""
    B, Sq, Wq = q_src.shape
    _, Sk, Wkv = kv_src.shape
    D = h * dk

    # Head grouping: smallest group whose lane width is 128-aligned, so head
    # slicing via BlockSpec is layout-legal and fills the MXU columns; otherwise
    # fall back to one full-width (always legal) block per batch row.
    g = h
    for cand in range(1, h + 1):
        if h % cand == 0 and (cand * dk) % 128 == 0:
            g = cand
            break
    gd = g * dk
    grouped = (gd % 128 == 0)
    num_groups = h // g if grouped else 1
    # TODO(synk): flash-style Sq/Sk tiling for long sequences (full (Sq,Sk) score
    # block assumed to fit VMEM here).

    if grouped:
        qb, kb, vb = q_off // gd, k_off // gd, v_off // gd
        q_spec = pl.BlockSpec((1, Sq, gd), lambda b, j: (b, 0, qb + j))
        k_spec = pl.BlockSpec((1, Sk, gd), lambda b, j: (b, 0, kb + j))
        v_spec = pl.BlockSpec((1, Sk, gd), lambda b, j: (b, 0, vb + j))
        out_spec = pl.BlockSpec((1, Sq, gd), lambda b, j: (b, 0, j))
        kern = functools.partial(_mha_kernel, heads=g, dk=dk,
                                 q_off=0, k_off=0, v_off=0)
    else:
        # Full-width blocks; k/v share the kv_src block (duplicate DMA is tiny here).
        q_spec = pl.BlockSpec((1, Sq, Wq), lambda b, j: (b, 0, 0))
        k_spec = pl.BlockSpec((1, Sk, Wkv), lambda b, j: (b, 0, 0))
        v_spec = pl.BlockSpec((1, Sk, Wkv), lambda b, j: (b, 0, 0))
        out_spec = pl.BlockSpec((1, Sq, D), lambda b, j: (b, 0, 0))
        kern = functools.partial(_mha_kernel, heads=h, dk=dk,
                                 q_off=q_off, k_off=k_off, v_off=v_off)

    cost = pl.CostEstimate(
        flops=int(4 * B * h * Sq * Sk * dk),
        transcendentals=int(B * h * Sq * Sk),
        bytes_accessed=int(2 * B * (Sq * Wq + 2 * Sk * Wkv + Sq * D) + 4 * B * Sq * Sk))

    return pl.pallas_call(
        kern,
        out_shape=jax.ShapeDtypeStruct((B, Sq, D), jnp.bfloat16),
        grid=(B, num_groups),
        in_specs=[q_spec, k_spec, v_spec,
                  pl.BlockSpec((1, Sq, Sk), lambda b, j: (b, 0, 0))],
        out_specs=out_spec,
        compiler_params=pltpu.CompilerParams(
            dimension_semantics=("parallel", "parallel"),
            vmem_limit_bytes=_VMEM_LIMIT),
        cost_estimate=cost,
    )(q_src, kv_src, kv_src, bias)


def ffn_fused(x, w1t, b1, w2t, b2, *, eps=1e-6):
    """x + linear2(relu(linear1(norm(x)))) fused in a single pallas_call."""
    B, S, D = x.shape
    assert S >= 2
    dff = w1t.shape[1]
    tf = _pick_tn(dff)
    kern = functools.partial(_ffn_kernel, eps=eps, seq=float(S))
    cost = pl.CostEstimate(
        flops=int(4 * B * S * D * dff),
        transcendentals=int(B * D),
        bytes_accessed=int(8 * B * S * D + 4 * D * dff + 4 * (D + dff)))
    return pl.pallas_call(
        kern,
        out_shape=jax.ShapeDtypeStruct((B, S, D), jnp.float32),
        grid=(B, dff // tf),
        in_specs=[
            pl.BlockSpec((1, S, D), lambda bi, j: (bi, 0, 0)),
            pl.BlockSpec((D, tf), lambda bi, j: (0, j)),
            pl.BlockSpec((1, tf), lambda bi, j: (0, j)),
            pl.BlockSpec((tf, D), lambda bi, j: (j, 0)),
            pl.BlockSpec((1, D), lambda bi, j: (0, 0)),
        ],
        out_specs=pl.BlockSpec((1, S, D), lambda bi, j: (bi, 0, 0)),
        scratch_shapes=[pltpu.VMEM((S, D), jnp.bfloat16),
                        pltpu.VMEM((S, D), jnp.float32)],
        compiler_params=pltpu.CompilerParams(
            dimension_semantics=("parallel", "arbitrary"),
            vmem_limit_bytes=_VMEM_LIMIT),
        cost_estimate=cost,
    )(x, w1t, b1, w2t, b2)


# ---------------------------------------------------------------------------
# Parameter packing (done ONCE, outside the forward pass)
# ---------------------------------------------------------------------------
def pack_params(p, h):
    """Pre-transpose weights to (Din, Dout) bf16, fuse QKV / KV concatenations,
    reshape biases to (1, Dout) f32, and fold 1/sqrt(dk) into the Q projections."""
    d_model = p["wq_s"].shape[1]
    dk = d_model // h
    scale = 1.0 / math.sqrt(dk)

    def wt(w):
        return jnp.transpose(w).astype(jnp.bfloat16)

    def bb(b):
        return b.reshape(1, -1).astype(jnp.float32)

    pp = {}
    wqkv = jnp.concatenate([p["wq_s"] * scale, p["wk_s"], p["wv_s"]], axis=0)
    bqkv = jnp.concatenate([p["bq_s"] * scale, p["bk_s"], p["bv_s"]], axis=0)
    pp["wqkv_s_t"], pp["bqkv_s"] = wt(wqkv), bb(bqkv)
    pp["wo_s_t"], pp["bo_s"] = wt(p["wo_s"]), bb(p["bo_s"])
    pp["wq_c_t"], pp["bq_c"] = wt(p["wq_c"] * scale), bb(p["bq_c"] * scale)
    wkv = jnp.concatenate([p["wk_c"], p["wv_c"]], axis=0)
    bkv = jnp.concatenate([p["bk_c"], p["bv_c"]], axis=0)
    pp["wkv_c_t"], pp["bkv_c"] = wt(wkv), bb(bkv)
    pp["wo_c_t"], pp["bo_c"] = wt(p["wo_c"]), bb(p["bo_c"])
    pp["w1_t"], pp["b1"] = wt(p["w1"]), bb(p["b1"])
    pp["w2_t"], pp["b2"] = wt(p["w2"]), bb(p["b2"])
    return pp


def decoder_block(x, enc, src_mask, tgt_mask, pp, h):
    """DecoderBlock forward.  x: (B,S_tgt,D) f32 residual stream, enc: (B,S_src,D) f32."""
    D = x.shape[-1]
    dk = D // h
    # Additive attention bias precomputed once (replaces in-kernel masked_fill).
    self_bias = jnp.where(tgt_mask == 0.0, -1e9, 0.0).astype(jnp.float32)
    cross_bias = jnp.where(src_mask == 0.0, -1e9, 0.0).astype(jnp.float32)

    # --- residual connection 0: self-attention (q=k=v=norm(x)) ---------------
    qkv = norm_linear(x, pp["wqkv_s_t"], pp["bqkv_s"])            # (B,S,3D) bf16
    attn = mha(qkv, qkv, self_bias, h=h, dk=dk, q_off=0, k_off=D, v_off=2 * D)
    x = linear_residual(attn, pp["wo_s_t"], pp["bo_s"], x)        # f32 residual

    # --- residual connection 1: cross-attention (k,v from encoder output) ----
    q = norm_linear(x, pp["wq_c_t"], pp["bq_c"])                  # (B,S,D) bf16
    kv = linear(enc.astype(jnp.bfloat16), pp["wkv_c_t"], pp["bkv_c"])  # (B,S,2D) bf16
    attn = mha(q, kv, cross_bias, h=h, dk=dk, q_off=0, k_off=0, v_off=D)
    x = linear_residual(attn, pp["wo_c_t"], pp["bo_c"], x)

    # --- residual connection 2: feed-forward (fully fused in VMEM) -----------
    x = ffn_fused(x, pp["w1_t"], pp["b1"], pp["w2_t"], pp["b2"])
    return x


# ---------------------------------------------------------------------------
# Pure-JAX reference (mirrors the kernels' bf16-MXU / f32-accumulate numerics)
# ---------------------------------------------------------------------------
def _ref_norm(x, eps=1e-6):
    mean = jnp.mean(x, axis=-1, keepdims=True)
    std = jnp.std(x, axis=1, keepdims=True, ddof=1)      # torch.std: unbiased
    return (x - mean) / (std + eps)


def _ref_linear(a, w, b):
    return jnp.einsum("bsd,de->bse", a.astype(jnp.bfloat16),
                      jnp.transpose(w).astype(jnp.bfloat16),
                      preferred_element_type=jnp.float32) + b


def _ref_mha(q, k, v, mask, h, wq, bq, wk, bk, wv, bv, wo, bo):
    B, Sq, D = q.shape
    dk = D // h
    qh = _ref_linear(q, wq, bq).reshape(B, Sq, h, dk).transpose(0, 2, 1, 3)
    kh = _ref_linear(k, wk, bk).reshape(B, -1, h, dk).transpose(0, 2, 1, 3)
    vh = _ref_linear(v, wv, bv).reshape(B, -1, h, dk).transpose(0, 2, 1, 3)
    qh, kh, vh = (t.astype(jnp.bfloat16) for t in (qh, kh, vh))
    s = jnp.einsum("bhqd,bhkd->bhqk", qh, kh,
                   preferred_element_type=jnp.float32) / math.sqrt(dk)
    s = jnp.where(mask[:, None, :, :] == 0.0, -1e9, s)
    a = jax.nn.softmax(s, axis=-1)
    o = jnp.einsum("bhqk,bhkd->bhqd", a.astype(jnp.bfloat16), vh,
                   preferred_element_type=jnp.float32)
    o = o.transpose(0, 2, 1, 3).reshape(B, Sq, D)
    return _ref_linear(o, wo, bo)


def _ref_decoder_block(x, enc, src_mask, tgt_mask, p, h):
    nx = _ref_norm(x)
    x = x + _ref_mha(nx, nx, nx, tgt_mask, h, p["wq_s"], p["bq_s"], p["wk_s"],
                     p["bk_s"], p["wv_s"], p["bv_s"], p["wo_s"], p["bo_s"])
    nx = _ref_norm(x)
    x = x + _ref_mha(nx, enc, enc, src_mask, h, p["wq_c"], p["bq_c"], p["wk_c"],
                     p["bk_c"], p["wv_c"], p["bv_c"], p["wo_c"], p["bo_c"])
    nx = _ref_norm(x)
    x = x + _ref_linear(jax.nn.relu(_ref_linear(nx, p["w1"], p["b1"])),
                        p["w2"], p["b2"])
    return x


def init_params(key, d_model, h, d_ff):
    ks = jax.random.split(key, 20)

    def lin(kw, kb, dout, din):
        w = jax.random.normal(kw, (dout, din), jnp.float32) / math.sqrt(din)
        b = 0.1 * jax.random.normal(kb, (dout,), jnp.float32)
        return w, b

    p = {}
    p["wq_s"], p["bq_s"] = lin(ks[0], ks[1], d_model, d_model)
    p["wk_s"], p["bk_s"] = lin(ks[2], ks[3], d_model, d_model)
    p["wv_s"], p["bv_s"] = lin(ks[4], ks[5], d_model, d_model)
    p["wo_s"], p["bo_s"] = lin(ks[6], ks[7], d_model, d_model)
    p["wq_c"], p["bq_c"] = lin(ks[8], ks[9], d_model, d_model)
    p["wk_c"], p["bk_c"] = lin(ks[10], ks[11], d_model, d_model)
    p["wv_c"], p["bv_c"] = lin(ks[12], ks[13], d_model, d_model)
    p["wo_c"], p["bo_c"] = lin(ks[14], ks[15], d_model, d_model)
    p["w1"], p["b1"] = lin(ks[16], ks[17], d_ff, d_model)
    p["w2"], p["b2"] = lin(ks[18], ks[19], d_model, d_ff)
    return p


if __name__ == "__main__":
    B, S_tgt, S_src = 2, 8, 8
    d_model, h, d_ff = 32, 4, 64

    key = jax.random.PRNGKey(0)
    kx, ke, kp = jax.random.split(key, 3)
    x = jax.random.normal(kx, (B, S_tgt, d_model), jnp.float32)
    enc = jax.random.normal(ke, (B, S_src, d_model), jnp.float32)
    tgt_mask = jnp.broadcast_to(
        jnp.tril(jnp.ones((S_tgt, S_tgt), jnp.float32)), (B, S_tgt, S_tgt))
    src_mask = jnp.ones((B, S_tgt, S_src), jnp.float32)
    params = init_params(kp, d_model, h, d_ff)
    packed = pack_params(params, h)          # one-time packing, outside the forward

    out = decoder_block(x, enc, src_mask, tgt_mask, packed, h)
    out = jax.block_until_ready(out)

    ref = _ref_decoder_block(x, enc, src_mask, tgt_mask, params, h)
    assert out.shape == (B, S_tgt, d_model)
    assert bool(jnp.all(jnp.isfinite(out)))
    max_err = float(jnp.max(jnp.abs(out - ref)))
    assert jnp.allclose(out, ref, atol=5e-2, rtol=5e-2), f"mismatch: max|err|={max_err}"

    print("KERNEL_OK")
</pallas_src>

<mosaic_0001>
module attributes {stable_mosaic.version = 11 : i64} {
  func.func @_norm_linear_kernel(%arg0: i32, %arg1: i32, %arg2: memref<1x8x32xf32, #tpu.memory_space<vmem>>, %arg3: memref<32x96xbf16, #tpu.memory_space<vmem>>, %arg4: memref<1x96xf32, #tpu.memory_space<vmem>>, %arg5: memref<1x8x96xbf16, #tpu.memory_space<vmem>>, %arg6: memref<8x32xbf16, #tpu.memory_space<vmem>>) attributes {dimension_semantics = [#tpu.dimension_semantics<parallel>, #tpu.dimension_semantics<arbitrary>], iteration_bounds = array<i64: 2, 1>, scalar_prefetch = 0 : i64, scratch_operands = 1 : i64, tpu.core_type = #tpu.core_type<tc>, window_params = [{transform_indices = @transform_0, window_bounds = array<i64: 1, 8, 32>}, {transform_indices = @transform_1, window_bounds = array<i64: 32, 96>}, {transform_indices = @transform_2, window_bounds = array<i64: 1, 96>}, {transform_indices = @transform_3, window_bounds = array<i64: 1, 8, 96>}]} {
    %c0_i32 = arith.constant 0 : i32
    %0 = arith.cmpi eq, %arg1, %c0_i32 : i32
    %1 = arith.extui %0 : i1 to i32
    %c0_i32_0 = arith.constant 0 : i32
    %2 = arith.cmpi ne, %1, %c0_i32_0 : i32
    scf.if %2 {
      %c0_9 = arith.constant 0 : index
      %c0_10 = arith.constant 0 : index
      %c0_11 = arith.constant 0 : index
      %13 = vector.load %arg2[%c0_9, %c0_10, %c0_11] : memref<1x8x32xf32, #tpu.memory_space<vmem>>, vector<1x8x32xf32>
      %14 = vector.shape_cast %13 : vector<1x8x32xf32> to vector<8x32xf32>
      %cst_12 = arith.constant dense<0.000000e+00> : vector<8xf32>
      %15 = vector.multi_reduction <add>, %14, %cst_12 [1] : vector<8x32xf32> to vector<8xf32>
      %16 = vector.shape_cast %15 : vector<8xf32> to vector<8x1xf32>
      %cst_13 = arith.constant 3.200000e+01 : f32
      %17 = vector.broadcast %cst_13 : f32 to vector<8x1xf32>
      %18 = arith.divf %16, %17 : vector<8x1xf32>
      %cst_14 = arith.constant dense<0.000000e+00> : vector<32xf32>
      %19 = vector.multi_reduction <add>, %14, %cst_14 [0] : vector<8x32xf32> to vector<32xf32>
      %20 = vector.shape_cast %19 : vector<32xf32> to vector<1x32xf32>
      %21 = arith.mulf %14, %14 : vector<8x32xf32>
      %cst_15 = arith.constant dense<0.000000e+00> : vector<32xf32>
      %22 = vector.multi_reduction <add>, %21, %cst_15 [0] : vector<8x32xf32> to vector<32xf32>
      %23 = vector.shape_cast %22 : vector<32xf32> to vector<1x32xf32>
      %24 = arith.mulf %20, %20 : vector<1x32xf32>
      %cst_16 = arith.constant 8.000000e+00 : f32
      %25 = vector.broadcast %cst_16 : f32 to vector<1x32xf32>
      %26 = arith.divf %24, %25 : vector<1x32xf32>
      %27 = arith.subf %23, %26 : vector<1x32xf32>
      %cst_17 = arith.constant 7.000000e+00 : f32
      %28 = vector.broadcast %cst_17 : f32 to vector<1x32xf32>
      %29 = arith.divf %27, %28 : vector<1x32xf32>
      %cst_18 = arith.constant 0.000000e+00 : f32
      %30 = vector.broadcast %cst_18 : f32 to vector<1x32xf32>
      %31 = arith.maximumf %29, %30 : vector<1x32xf32>
      %32 = math.sqrt %31 : vector<1x32xf32>
      %33 = vector.broadcast %18 : vector<8x1xf32> to vector<8x32xf32>
      %34 = arith.subf %14, %33 : vector<8x32xf32>
      %cst_19 = arith.constant 9.99999997E-7 : f32
      %35 = vector.broadcast %cst_19 : f32 to vector<1x32xf32>
      %36 = arith.addf %32, %35 : vector<1x32xf32>
      %37 = vector.broadcast %36 : vector<1x32xf32> to vector<8x32xf32>
      %38 = arith.divf %34, %37 : vector<8x32xf32>
      %39 = arith.truncf %38 : vector<8x32xf32> to vector<8x32xbf16>
      %c0_20 = arith.constant 0 : index
      %c0_21 = arith.constant 0 : index
      %40 = vector.load %arg6[%c0_20, %c0_21] : memref<8x32xbf16, #tpu.memory_space<vmem>>, vector<8x32xbf16>
      tpu.vector_store %arg6[%c0_20, %c0_21], %39 {strides = array<i32>} : memref<8x32xbf16, #tpu.memory_space<vmem>>, vector<8x32xbf16>,
    } else {
    }
    %c0 = arith.constant 0 : index
    %c0_1 = arith.constant 0 : index
    %3 = vector.load %arg6[%c0, %c0_1] : memref<8x32xbf16, #tpu.memory_space<vmem>>, vector<8x32xbf16>
    %c0_2 = arith.constant 0 : index
    %c0_3 = arith.constant 0 : index
    %4 = vector.load %arg3[%c0_2, %c0_3] : memref<32x96xbf16, #tpu.memory_space<vmem>>, vector<32x96xbf16>
    %cst = arith.constant dense<0.000000e+00> : vector<8x96xf32>
    %5 = tpu.matmul %3, %4, %cst {dimension_numbers = #tpu.dot_dimension_numbers<[1], [0], [0], [1], [0, 0, 1, 1], [], []>} : vector<8x32xbf16>, vector<32x96xbf16>, vector<8x96xf32> -> vector<8x96xf32>
    %c0_4 = arith.constant 0 : index
    %c0_5 = arith.constant 0 : index
    %6 = vector.load %arg4[%c0_4, %c0_5] : memref<1x96xf32, #tpu.memory_space<vmem>>, vector<1x96xf32>
    %7 = vector.broadcast %6 : vector<1x96xf32> to vector<8x96xf32>
    %8 = arith.addf %5, %7 : vector<8x96xf32>
    %9 = arith.truncf %8 : vector<8x96xf32> to vector<8x96xbf16>
    %c0_6 = arith.constant 0 : index
    %c0_7 = arith.constant 0 : index
    %c0_8 = arith.constant 0 : index
    %10 = vector.load %arg5[%c0_6, %c0_7, %c0_8] : memref<1x8x96xbf16, #tpu.memory_space<vmem>>, vector<1x8x96xbf16>
    %11 = vector.shape_cast %10 : vector<1x8x96xbf16> to vector<8x96xbf16>
    %12 = vector.shape_cast %9 : vector<8x96xbf16> to vector<1x8x96xbf16>
    tpu.vector_store %arg5[%c0_6, %c0_7, %c0_8], %12 {strides = array<i32>} : memref<1x8x96xbf16, #tpu.memory_space<vmem>>, vector<1x8x96xbf16>,
    return
  }
  func.func @transform_0(%arg0: i32, %arg1: i32) -> (i32, i32, i32) {
    %c0_i32 = arith.constant 0 : i32
    %c0_i32_0 = arith.constant 0 : i32
    %c0_i32_1 = arith.constant 0 : i32
    return %arg0, %c0_i32, %c0_i32_0 : i32, i32, i32
  }
  func.func @transform_1(%arg0: i32, %arg1: i32) -> (i32, i32) {
    %c0_i32 = arith.constant 0 : i32
    %c0_i32_0 = arith.constant 0 : i32
    return %c0_i32, %arg1 : i32, i32
  }
  func.func @transform_2(%arg0: i32, %arg1: i32) -> (i32, i32) {
    %c0_i32 = arith.constant 0 : i32
    %c0_i32_0 = arith.constant 0 : i32
    return %c0_i32, %arg1 : i32, i32
  }
  func.func @transform_3(%arg0: i32, %arg1: i32) -> (i32, i32, i32) {
    %c0_i32 = arith.constant 0 : i32
    %c0_i32_0 = arith.constant 0 : i32
    return %arg0, %c0_i32, %arg1 : i32, i32, i32
  }
}

</mosaic_0001>

<bundles_post_ra>
// kernel: tpu_custom_call.1
= control target key start
LH: loop header
LB: loop body
LE: loop exit
PB: predicated region body
PF: predicated region fallthrough
CT: control target
= control target key end

     0   :  { %8 = vsyncpa [#allocation4], 0  ;;  %s939_s0 = inlined_call_operand.hbm [shape: f32[2,8,32], index: 0, kind: input, shape index: {}]   ;;  %s940_s1 = inlined_call_operand.hbm [shape: bf16[32,96], index: 1, kind: input, shape index: {}]   ;;  %s941_s2 = inlined_call_operand.vmem [shape: f32[1,96], index: 2, kind: input, shape index: {}]   ;;  %s942_s3 = inlined_call_operand.hbm [shape: bf16[2,8,96], index: 3, kind: output, shape index: {}]  }
   0x1   :  { %10 = vsyncpa [#allocation4 + $0x1], 0 }
   0x2   :  { %11 = vsyncpa [#allocation7], 0 }
   0x3   :  { %12 = vsyncpa [#allocation5], 0 }
   0x4   :  { %14 = vsyncpa [#allocation5 + $0x1], 0  ;;  %s753_s12 = smov 0   ;;  %s755_s13 = smov 0  }
   0x5   :  { %s757_s14 = smov 0   ;;  %s759_s15 = smov 0  }
   0x6   :  { %s761_s16 = smov 0   ;;  %s763_s17 = smov 0  }
   0x7 LB: > { %s472_s18 = sadd.s32 4294967295, %s724_s17   ;;  %s473_s19 = sadd.s32 4294967294, %s724_s17   ;;  %s724_s17 = sphi %s763_s17, %s20_s17   ;;  %s720_s16 = sphi %s761_s16, %s960_s16   ;;  %s716_s15 = sphi %s759_s15, %s959_s15   ;;  %s712_s14 = sphi %s757_s14, %s958_s14   ;;  %s708_s13 = sphi %s755_s13, %s957_s13   ;;  %s704_s12 = sphi %s753_s12, %s956_s12  }
   0x8   : > { %p52_p0 = scmp.ne.s32.totalorder %s708_s13, %s704_s12  ;;  %p787_p1 = scmp.eq.s32.totalorder %s472_s18, 0 }
   0x9   : > { %p791_p2 = scmp.eq.s32.totalorder %s472_s18, 1  ;;  %p136_p3 = scmp.eq.s32.totalorder %s473_s19, 1 }
   0xa   : > { %p797_p4 = por %p787_p1, %p52_p0  ;;  %p474_p5 = scmp.ge.s32.totalorder %s724_s17, 1 }
   0xb   : > { %p802_p6 = por %p136_p3, %p52_p0  ;;  %p143_p7 = scmp.lt.s32.totalorder %s724_s17, 3 }
   0xc   : > { %s946_s22 = scalar_select %p797_p4, 1, 0 }
   0xd   : > { %s947_s23 = scalar_select %p802_p6, 1, 0 }
   0xe   : > { %p807_p8 = pnand %p474_p5, %p143_p7  ;;  %s726_s25 = smov [#allocation6]  }
   0xf   : > { %s157_s26 = sshll.u32 %s726_s25, 4  ;;  %s32_s28 = sadd.s32 1, %s720_s16  ;;  %s158_s26 = int_to_ptr.vmem [resolvable:$true] %s157_s26 }
  0x10   : > { %p511_p9 = pneg %p807_p8  ;;  %s597_s29 = scalar_lea.vmem %s158_s26, 256 }
  0x11   : > { %p598_p13 = scmp.ne.s32.totalorder %s158_s26, %s597_s29  ;;  %p605_p5 = scmp.lt.s32.totalorder %s158_s26, %s158_s26 }
  0x12   : > { %p816_p11 = pnand %p511_p9, %p787_p1  ;;  %p606_p7 = scmp.lt.s32.totalorder %s597_s29, %s597_s29 }
  0x14   : > { %p588_p12 = pneg %p816_p11  ;;  %p607_p6 = por %p606_p7, %p605_p5 }
  0x16   : > { %p600_p0 = pnand %p598_p13, %p588_p12 }
  0x18   : > { %p601_p3 = pneg %p600_p0 }
  0x1a   : > { %p608_p4 = pnand %p607_p6, %p601_p3 }
  0x1c   : > { %611 = shalt.err (!%p608_p4)
}
  0x1d   : > { %s727_s30 = smov 64   ;;  %s728_s4 = smov 4  }
  0x1e   : > { %514 = dma.hbm_to_vmem [thread:$0]  (!%p816_p11), %s940_s1, 256, %s158_s26, [#allocation7], %s727_s30, %s727_s30, %s728_s4  }
  0x1f   : > { %p34_p6 = scmp.ge.s32.totalorder %s32_s28, 2  ;;  %s39_s7 = sadd.s32 1, %s712_s14 }
  0x20   : > { %p46_p4 = scmp.ne.s32.totalorder %s712_s14, %s708_s13  ;;  %p47_p9 = scmp.eq.s32.totalorder %s724_s17, 0 }
  0x21   : > { %s962_s28 = smov (%p34_p6, %s32_s28), 0  ;;  %p524_p0 = scmp.lt.s32.totalorder %s724_s17, 2 }
  0x22   : > { %p834_p12 = por %p47_p9, %p46_p4  ;;  %p840_p13 = por %p791_p2, %p46_p4 }
  0x23   : > { %s36_s10 = ssub.s32 %s720_s16, %s962_s28  ;;  %s177_s11 = sand.u32 1, %s712_s14  }
  0x24   : > { %p37_p11 = scmp.eq.s32.totalorder %s36_s10, 0  ;;  %s478_s18 = sshll.u32 %s177_s11, 3 }
  0x25   : > { %s479_s25 = sshll.u32 %s720_s16, 7  ;;  %s181_s30 = scalar_lea.vmem [#allocation3], %s478_s18 }
  0x26   : > { %s849_s19 = scalar_select %p37_p11, %s712_s14, %s39_s7  }
  0x27   : > { %s186_s29 = scalar_lea.hbm %s939_s0, %s479_s25  ;;  %s188_s4 = sshll.u32 %s181_s30, 4  ;;  %s189_s4 = int_to_ptr.vmem [resolvable:$true] %s188_s4 }
  0x28   : > { %p857_p2 = pnand %p524_p0, %p834_p12  ;;  %s178_s5 = scalar_lea.sflag [#allocation4], %s177_s11 }
  0x29   : > { %s625_s6 = scalar_lea.vmem %s189_s4, 128  ;;  %s729_s7 = smov [#allocation3]  }
  0x2a   : > { %p614_p3 = pneg %p857_p2  ;;  %p626_p5 = scmp.ne.s32.totalorder %s189_s4, %s625_s6 }
  0x2b   : > { %s630_s10 = sshll.u32 %s729_s7, 4  ;;  %s631_s10 = int_to_ptr.vmem [resolvable:$false] %s630_s10 }
  0x2c   : > { %p628_p7 = pnand %p626_p5, %p614_p3  ;;  %s632_s25 = scalar_lea.vmem %s631_s10, 256 }
  0x2d   : > { %p633_p4 = scmp.lt.s32.totalorder %s189_s4, %s631_s10  ;;  %p634_p9 = scmp.lt.s32.totalorder %s632_s25, %s625_s6 }
  0x2e   : > { %p629_p6 = pneg %p628_p7 }
  0x2f   : > { %p635_p11 = por %p634_p9, %p633_p4 }
  0x31   : > { %p636_p10 = pnand %p635_p11, %p629_p6 }
  0x33   : > { %639 = shalt.err (!%p636_p10)
}
  0x34   : > { %518 = dma.hbm_to_vmem [thread:$0]  (!%p857_p2), %s186_s29, 128, %s189_s4, %s178_s5  }
  0x35   : > { %197 = sbr.rel (%p807_p8) target bundleno = 428 (0x1ac), region = 32  ;;  %s868_s8 = sand.u32 (!%p807_p8), 1, %s708_s13  }
  0x36   : > { %s481_s11 = sshll.u32 (!%p807_p8), %s868_s8, 3  ;;  %s200_s18 = scalar_lea.sflag (!%p807_p8), [#allocation4], %s868_s8 }
  0x37   : > { %s203_s26 = scalar_lea.vmem (!%p807_p8), [#allocation3], %s481_s11  ;;  %p953_p12 = scmp.ne.s32.totalorder (!%p807_p8), %s946_s22, 0 }
  0x3a   : > { %691 = dma.done.wait (%p953_p12), %s200_s18, 128  }
  0x3b   : > { %693 = vsyncadd (%p953_p12), %s200_s18, 4294967168 }
  0x3c   : > { %695 = dma.done.wait (%p787_p1), [#allocation7], 256  }
  0x3d   : > { %697 = vsyncadd (%p787_p1), [#allocation7], 4294967040  ;;  %vm242_vm0 = vcmask 261120   ;;  %v241_v0 = vld [vmem:[%s203_s26] sm:$0xff]  ;;  %v580_v2 = vld [vmem:[#allocation6 + $0x8] sm:$0xff]   ;;  %v730_v3 = vmov 0.0  }
  0x3e   : > { %v243_v1 = vsel %vm242_vm0, %v241_v0, 0.0  ;;  %495 = vmatprep.subr.bf16.mxu0 %v730_v3  ;;  %v581_v4 = vld [vmem:[#allocation6] sm:$0xff]   ;;  %vm731_vm1 = vmmov 0   ;;  %v254_v6 = vmul.f32 %v241_v0, %v241_v0  ;;  %vm281_vm4 = vcmask 257024   ;;  %s483_s20 = sshll.u32 %s868_s8, 2  ;;  %s489_s27 = sshll.u32 %s716_s15, 6 }
  0x3f   : > { %244 = vadd.xlane.f32.xlu0 %v243_v1  ;;  %496 = vmatpush3.bf16.msra.mxu0 %v580_v2  ;;  %v248_v5 = vrot.slane %v243_v1, 4  ;;  %v484_v37 = vld [vmem:[%s941_s2] ss:$0 sm:$0xff]  ;;  %s232_s29 = scalar_lea.vmem [#allocation8], %s483_s20  ;;  %vm352_vm5 = vcmask 781312   ;;  %s891_s5 = scalar_lea.hbm %s942_s3, %s489_s27 }
  0x40   : > { %499 = vmatprep.mubr.msk.bf16.mxu0 %vm731_vm1, %v730_v3  ;;  %497 = vmatprep.subr.bf16.mxu0 %v730_v3  ;;  %v255_v8 = vsel %vm242_vm0, %v254_v6, 0.0  ;;  %s369_s30 = sshll.u32 %s232_s29, 4  ;;  %s355_s15 = scalar_lea.sflag [#allocation5], %s868_s8  ;;  %s893_s30 = int_to_ptr.vmem [resolvable:$true] %s369_s30 }
  0x41   : > { %v249_v7 = vadd.f32 %v248_v5, %v243_v1  ;;  %v256_v10 = vrot.slane %v255_v8, 4  ;;  %s640_s6 = scalar_lea.vmem %s893_s30, 64  ;;  %s732_s7 = smov [#allocation8]  }
  0x42   : > { %p641_p1 = scmp.ne.s32.totalorder %s893_s30, %s640_s6  ;;  %s644_s10 = sshll.u32 %s732_s7, 4  ;;  %s645_s10 = int_to_ptr.vmem [resolvable:$false] %s644_s10 }
  0x43   : > { %498 = vmatpush3.bf16.msra.mxu0 %v581_v4  ;;  %v250_v9 = vrot.slane %v249_v7, 2  ;;  %v257_v12 = vadd.f32 %v256_v10, %v255_v8  ;;  %s646_s25 = scalar_lea.vmem %s645_s10, 128  ;;  %p647_p0 = scmp.lt.s32.totalorder %s893_s30, %s645_s10 }
  0x44   : > { %p642_p8 = pnand %p641_p1, %p840_p13  ;;  %p648_p2 = scmp.lt.s32.totalorder %s646_s25, %s640_s6 }
  0x45   : > { %v251_v11 = vadd.f32 %v250_v9, %v249_v7  ;;  %v258_v14 = vrot.slane %v257_v12, 2 }
  0x46   : > { %p643_p10 = pneg %p642_p8  ;;  %p649_p3 = por %p648_p2, %p647_p0 }
  0x47   : > { %v252_v13 = vrot.slane %v251_v11, 1  ;;  %v259_v16 = vadd.f32 %v258_v14, %v257_v12 }
  0x48   : > { %p650_p5 = pnand %p649_p3, %p643_p10 }
  0x49   : > { %v253_v15 = vadd.f32 %v252_v13, %v251_v11  ;;  %v260_v17 = vrot.slane %v259_v16, 1 }
  0x4b   : > { %v262_v18 = vmul.f32 %v253_v15, %v253_v15  ;;  %v261_v19 = vadd.f32 %v260_v17, %v259_v16 }
  0x4d   : > { %v264_v20 = vmul.f32 0.125, %v262_v18 }
  0x4f   : > { %v265_v21 = vsub.f32 %v261_v19, %v264_v20 }
  0x51   : > { %v267_v22 = vmul.f32 0.14285715, %v265_v21 }
  0x53   : > { %v268_v23 = vmax.f32 %v267_v22, 0.0 }
  0x55   : > { %582 = vrsqrt.f32 %v268_v23  ;;  %vm271_vm2 = vcmp.eq.f32.partialorder %v268_v23, inf  ;;  %v274_v26 = vand.u32 2147483648, %v268_v23  ;;  %vm273_vm3 = vcmp.eq.f32.partialorder %v268_v23, 0.0 }
  0x62   : > { %v583_v24 = vpop.eup %582 }
  0x63   : > { %v270_v25 = vmul.f32 %v583_v24, %v268_v23 }
  0x65   : > { %v272_v27 = vsel %vm271_vm2, %v268_v23, %v270_v25 }
  0x66   : > { %v275_v28 = vsel %vm273_vm3, %v274_v26, %v272_v27 }
  0x67   : > { %v277_v29 = vadd.f32 1e-06, %v275_v28 }
  0x69   : > { %584 = vrcp.f32 %v277_v29 }
  0x76   : > { %v585_v32 = vpop.eup %584 }
  0xc8   : > { %v245_v30 = vpop.xlane.xlu0 %244 }
  0xc9   : > { %v247_v31 = vmul.f32 0.03125, %v245_v30 }
  0xcb   : > { %v276_v33 = vsub.f32 %v241_v0, %v247_v31 }
  0xcd   : > { %v279_v34 = vmul.f32 %v585_v32, %v276_v33 }
  0xcf   : > { %v280_v35 = vpack.c.bf16 %v279_v34, %v279_v34 }
  0xd1   : > { %282 = vst.msk [vmem:[#allocation2] sm:$0xf] %vm281_vm4, %v280_v35 }
  0xd8   : > { %v283_v36 = vld [vmem:[#allocation2] sm:$0xf] }
  0xd9   : > { %500 = vmatmul.mubr.msk.bf16.vlgmr.msra.gmra.mxu0 %vm242_vm0, %v283_v36 }
 0x199   : > { %v345_v38 = vpop.f32.mrf.mxu0 }
 0x19a   : > { %v346_v39 = vadd.f32 %v484_v37, %v345_v38 }
 0x19b   : > { %v501_v40 = vpop.f32.mrf.mxu0 }
 0x19c   : > { %v351_v41 = vpack.c.bf16 %v346_v39, %v346_v39 }
 0x19d   : > { %v348_v42 = vpop.f32.mrf.mxu0 }
 0x19e   : > { %353 = vst.msk [vmem:[%s232_s29] sm:$0xf] %vm352_vm5, %v351_v41 }
 0x19f   : > { %v502_v43 = vpop.f32.mrf.mxu0 }
 0x1a0   : > { %653 = shalt.err (!%p650_p5)
}
 0x1a1   : > { %s654_s11 = scalar_lea.hbm %s891_s5, 64  ;;  %s658_s26 = scalar_lea.hbm %s942_s3, 128 }
 0x1a2   : > { %p655_p7 = scmp.ne.s32.totalorder %s891_s5, %s654_s11  ;;  %p659_p9 = scmp.lt.s32.totalorder %s891_s5, %s942_s3 }
 0x1a3   : > { %p660_p11 = scmp.lt.s32.totalorder %s658_s26, %s654_s11 }
 0x1a4   : > { %p656_p6 = pnand %p655_p7, %p840_p13 }
 0x1a5   : > { %p661_p12 = por %p660_p11, %p659_p9 }
 0x1a6   : > { %p657_p4 = pneg %p656_p6 }
 0x1a8   : > { %p662_p1 = pnand %p661_p12, %p657_p4 }
 0x1aa   : > { %665 = shalt.err (!%p662_p1)
}
 0x1ab   : > { %509 = dma.vmem_to_hbm [thread:$0]  (%p840_p13), %s893_s30, 64, %s891_s5, %s355_s15  }
 0x1ac PF: > { %s381_s24 = sand.u32 1, %s704_s12   ;;  %p954_p8 = scmp.ne.s32.totalorder %s947_s23, 0 }
 0x1ad   : > { %p955_p10 = scmp.ge.s32.totalorder %s724_s17, 2  ;;  %s382_s27 = scalar_lea.sflag [#allocation5], %s381_s24 }
 0x1af   : > { %p520_p0 = pnand %p955_p10, %p954_p8 }
 0x1b1   : > { %p521_p2 = pneg %p520_p0 }
 0x1b3   : > { %699 = dma.done.wait (%p521_p2), %s382_s27, 64  }
 0x1b4   : > { %701 = vsyncadd (%p521_p2), %s382_s27, 4294967232  ;;  %s20_s17 = sadd.s32 1, %s724_s17   ;;  %s956_s12 = smov %s708_s13 }
 0x1b5   : > { %p17_p3 = scmp.ge.s32.totalorder %s20_s17, 4   ;;  %s957_s13 = smov %s712_s14 }
 0x1b6   : > { %s958_s14 = smov %s849_s19  ;;  %s959_s15 = smov %s720_s16 }
 0x1b7   : > { %s960_s16 = smov %s962_s28  ;;  %19 = sbr.rel (!%p17_p3) target bundleno = 7 (0x7), region = 89 }
 0x1bc   :  { %387 = vsyncpa [#allocation4], 1 }
 0x1bd   :  { %389 = vsyncpa [#allocation4 + $0x1], 1 }
 0x1be   :  { %390 = vsyncpa [#allocation7], 1 }
 0x1bf   :  { %391 = vsyncpa [#allocation5], 1 }
 0x1c0   :  { %393 = vsyncpa [#allocation5 + $0x1], 1 }

</bundles_post_ra>
